<compile_context>
chip_gen: v5e
topology: v5e:2x2
jax: 0.10.0
libtpu: 0.0.40
codegen_flags: <defaults>
</compile_context>

<pallas_src>
import functools

import jax
import jax.numpy as jnp
from jax import lax
from jax.experimental import pallas as pl
from jax.experimental.pallas import tpu as pltpu

EPS = 1e-5


# --------------------------------------------------------------------------
# Sizing helpers (padded, per-generation VMEM budget)
# --------------------------------------------------------------------------
def _pad_to(v, m):
    return -(-v // m) * m


def _sublane(itemsize):
    # Sublane packing granularity per element width.
    return {4: 8, 2: 16, 1: 32}.get(itemsize, 8)


def _vmem_budget_bytes():
    """Physical VMEM capacity minus headroom, clamped per generation."""
    cap = 64 * 1024 * 1024  # conservative default = v7x per-TensorCore VMEM
    try:
        info = pltpu.get_tpu_info()
        c = getattr(info, "vmem_capacity_bytes", None)
        if c:
            cap = int(c)
    except Exception:
        pass
    # ~16 MiB headroom for compiler-internal scratch / DMA machinery; cap at
    # ~100 MiB so 128 MiB parts (v5e/v6e) can still use large fused blocks.
    return max(min(cap - 16 * 1024 * 1024, 100 * 1024 * 1024), 32 * 1024 * 1024)


# --------------------------------------------------------------------------
# Kernels
# --------------------------------------------------------------------------
def _gn_fused_kernel(x_ref, gamma_ref, beta_ref, o_ref):
    # x_ref/o_ref: (1, Gb, Cg, HW) lane-dense block (Gb groups of one sample)
    # gamma_ref/beta_ref: (G, Cg, 1) full per-channel tables, VMEM-resident.
    Gb = x_ref.shape[1]
    Cg = x_ref.shape[2]
    HW = x_ref.shape[3]
    g0 = pl.program_id(1) * Gb
    inv_n = 1.0 / float(Cg * HW)

    # Two-pass (centered) statistics: free for an HBM-bound kernel, avoids
    # E[x^2]-E[x]^2 cancellation.  x_ref is re-read per expression so the
    # upcast stays fused per-vreg (matters for bf16/fp8 inputs).
    xf = x_ref[0].astype(jnp.float32)                                 # (Gb,Cg,HW)
    mean = jnp.sum(jnp.sum(xf, axis=-1, keepdims=True),
                   axis=-2, keepdims=True) * inv_n                    # (Gb,1,1)
    d = x_ref[0].astype(jnp.float32) - mean
    var = jnp.sum(jnp.sum(d * d, axis=-1, keepdims=True),
                  axis=-2, keepdims=True) * inv_n                     # (Gb,1,1)
    inv_std = lax.rsqrt(var + EPS)

    gamma_g = gamma_ref[pl.ds(g0, Gb)].astype(jnp.float32)            # (Gb,Cg,1)
    beta_g = beta_ref[pl.ds(g0, Gb)].astype(jnp.float32)

    # Fold normalization + affine into one fused multiply-add pass:
    #   out = (x - mean) * inv_std * gamma + beta = x * scale + shift
    scale = gamma_g * inv_std
    shift = beta_g - mean * scale
    o_ref[0] = (x_ref[0].astype(jnp.float32) * scale + shift).astype(o_ref.dtype)


def _gn_stats_kernel(x_ref, mean_ref, rstd_ref, sum_sc, sq_sc, *, inv_n):
    # Spatial-split pass A: accumulate sum / sum-of-squares over HW chunks.
    # x_ref: (1, 1, Cg, HWc);  mean_ref/rstd_ref: (1, 1, 1, 1) per (n, g).
    c = pl.program_id(2)

    @pl.when(c == 0)
    def _():
        sum_sc[...] = jnp.zeros_like(sum_sc)
        sq_sc[...] = jnp.zeros_like(sq_sc)

    xf = x_ref[0, 0].astype(jnp.float32)                              # (Cg, HWc)
    s_row = jnp.sum(xf, axis=-1, keepdims=True)                       # (Cg, 1)
    q_row = jnp.sum(xf * xf, axis=-1, keepdims=True)                  # (Cg, 1)
    sum_sc[...] += jnp.sum(s_row, axis=-2, keepdims=True)             # (1, 1)
    sq_sc[...] += jnp.sum(q_row, axis=-2, keepdims=True)              # (1, 1)

    @pl.when(c == pl.num_programs(2) - 1)
    def _():
        m = sum_sc[...] * inv_n
        v = jnp.maximum(sq_sc[...] * inv_n - m * m, 0.0)
        mean_ref[0, 0] = m
        rstd_ref[0, 0] = lax.rsqrt(v + EPS)


def _gn_norm_kernel(x_ref, mean_ref, rstd_ref, gamma_ref, beta_ref, o_ref):
    # Spatial-split pass B: normalize one HW chunk with the finalized stats.
    g = pl.program_id(1)
    m = mean_ref[0, 0]                                                # (1, 1)
    r = rstd_ref[0, 0]                                                # (1, 1)
    gamma_g = gamma_ref[g].astype(jnp.float32)                        # (Cg, 1)
    beta_g = beta_ref[g].astype(jnp.float32)
    scale = gamma_g * r
    shift = beta_g - m * scale
    o_ref[0, 0] = (x_ref[0, 0].astype(jnp.float32) * scale + shift).astype(o_ref.dtype)


# --------------------------------------------------------------------------
# Wrapper
# --------------------------------------------------------------------------
def group_norm_2d(x, gamma, beta, num_groups, *, force_spatial_split=False):
    """GroupNorm over NCHW input x with per-channel affine gamma/beta."""
    N, C, H, W = x.shape
    assert C % num_groups == 0, "channels must be divisible by num_groups"
    G = num_groups
    Cg = C // G
    HW = H * W

    # Lane-dense layout: spatial axis flattened onto the 128-wide lane axis.
    x3 = x.reshape(N, G, Cg, HW)
    gamma3 = gamma.reshape(G, Cg, 1)
    beta3 = beta.reshape(G, Cg, 1)

    itemsize = x.dtype.itemsize
    p_item = gamma.dtype.itemsize
    hw_pad = _pad_to(HW, 128)
    cg_pad_x = _pad_to(Cg, _sublane(itemsize))
    cg_pad_f32 = _pad_to(Cg, 8)

    # Padded (sublane, 128)-tile footprints.
    group_blk_native = cg_pad_x * hw_pad * itemsize           # one group block
    group_blk_f32 = cg_pad_f32 * hw_pad * 4                   # f32 temporaries
    # (G, Cg, 1) tables pad the lane dim 1 -> 128; count both, double-buffered.
    param_bytes = 2 * 2 * G * _pad_to(Cg, _sublane(p_item)) * 128 * p_item

    budget = _vmem_budget_bytes()

    def fused_fits(gb):
        # double-buffered in + out blocks + f32 compute temporaries + params.
        need = 4 * gb * group_blk_native + 2 * gb * group_blk_f32 + param_bytes
        return int(1.15 * need) + (2 << 20) <= budget

    def split_fits(hwc):
        hwc_pad = _pad_to(hwc, 128)
        blk = cg_pad_x * hwc_pad * itemsize
        blk_f32 = cg_pad_f32 * hwc_pad * 4
        stats = 4 * 2 * 8 * 128 * 4   # (1,1,1,1) mean/rstd blocks + scratch
        need = 4 * blk + 2 * blk_f32 + param_bytes + stats
        return int(1.15 * need) + (2 << 20) <= budget

    use_split = force_spatial_split or (not fused_fits(1))

    if not use_split:
        # -------- main path: fuse Gb groups per grid step --------
        divisors = [d for d in range(1, G + 1) if G % d == 0]
        fitting = [d for d in divisors if fused_fits(d)]
        Gb = max(fitting)
        # v7x megacore: keep >= 2 grid steps when possible so both TCs get work.
        if N * (G // Gb) < 2:
            smaller = [d for d in fitting if G // d >= 2]
            if smaller:
                Gb = max(smaller)
        grid = (N, G // Gb)

        x_spec = pl.BlockSpec((1, Gb, Cg, HW), lambda n, g: (n, g, 0, 0))
        out_spec = pl.BlockSpec((1, Gb, Cg, HW), lambda n, g: (n, g, 0, 0))
        # Full-extent, constant-index blocks => DMA'd once, stay VMEM-resident.
        param_spec = pl.BlockSpec((G, Cg, 1), lambda n, g: (0, 0, 0))

        out = pl.pallas_call(
            _gn_fused_kernel,
            out_shape=jax.ShapeDtypeStruct((N, G, Cg, HW), x.dtype),
            grid_spec=pltpu.PrefetchScalarGridSpec(
                num_scalar_prefetch=0,
                grid=grid,
                in_specs=[x_spec, param_spec, param_spec],
                out_specs=out_spec,
            ),
            compiler_params=pltpu.CompilerParams(
                dimension_semantics=("parallel", "parallel"),
                vmem_limit_bytes=budget,
            ),
            cost_estimate=pl.CostEstimate(
                flops=8 * N * C * HW,
                transcendentals=N * G,
                bytes_accessed=2 * N * C * HW * itemsize + 2 * C * p_item,
            ),
        )(x3, gamma3, beta3)
        return out.reshape(N, C, H, W)

    # -------- fallback path: spatial split over HW chunks --------
    nc = None
    for cand in range(2, HW + 1):
        if HW % cand:
            continue
        hwc_c = HW // cand
        if hwc_c % 128:
            continue
        if split_fits(hwc_c):
            nc = cand
            break
    if nc is None:
        # TODO(synk): ragged/masked HW chunking not implemented.
        raise NotImplementedError(
            "GN2d: group block exceeds VMEM and HW has no 128-aligned divisor")
    hwc = HW // nc

    x_spec = pl.BlockSpec((1, 1, Cg, hwc), lambda n, g, c: (n, g, 0, c))
    stat_spec = pl.BlockSpec((1, 1, 1, 1), lambda n, g, c: (n, g, 0, 0))
    param_spec3 = pl.BlockSpec((G, Cg, 1), lambda n, g, c: (0, 0, 0))

    # Pass A: per-(sample, group) mean and reciprocal std-dev.
    mean, rstd = pl.pallas_call(
        functools.partial(_gn_stats_kernel, inv_n=1.0 / float(Cg * HW)),
        out_shape=(jax.ShapeDtypeStruct((N, G, 1, 1), jnp.float32),
                   jax.ShapeDtypeStruct((N, G, 1, 1), jnp.float32)),
        grid_spec=pltpu.PrefetchScalarGridSpec(
            num_scalar_prefetch=0,
            grid=(N, G, nc),
            in_specs=[x_spec],
            out_specs=[stat_spec, stat_spec],
            scratch_shapes=[pltpu.VMEM((1, 1), jnp.float32),
                            pltpu.VMEM((1, 1), jnp.float32)],
        ),
        compiler_params=pltpu.CompilerParams(
            dimension_semantics=("parallel", "parallel", "arbitrary"),
            vmem_limit_bytes=budget,
        ),
    )(x3)

    # Pass B: fused scale/shift normalization, lane-dense chunked stores.
    out = pl.pallas_call(
        _gn_norm_kernel,
        out_shape=jax.ShapeDtypeStruct((N, G, Cg, HW), x.dtype),
        grid_spec=pltpu.PrefetchScalarGridSpec(
            num_scalar_prefetch=0,
            grid=(N, G, nc),
            in_specs=[x_spec, stat_spec, stat_spec, param_spec3, param_spec3],
            out_specs=pl.BlockSpec((1, 1, Cg, hwc), lambda n, g, c: (n, g, 0, c)),
        ),
        compiler_params=pltpu.CompilerParams(
            dimension_semantics=("parallel", "parallel", "parallel"),
            vmem_limit_bytes=budget,
        ),
        cost_estimate=pl.CostEstimate(
            flops=2 * N * C * HW,
            transcendentals=0,
            bytes_accessed=2 * N * C * HW * itemsize + 2 * C * p_item,
        ),
    )(x3, mean, rstd, gamma3, beta3)
    return out.reshape(N, C, H, W)


# --------------------------------------------------------------------------
# Pure-JAX reference (matches torch.nn.GroupNorm)
# --------------------------------------------------------------------------
def group_norm_ref(x, gamma, beta, num_groups):
    N, C, H, W = x.shape
    Cg = C // num_groups
    xg = x.reshape(N, num_groups, Cg * H * W).astype(jnp.float32)
    mean = xg.mean(axis=-1, keepdims=True)
    var = ((xg - mean) ** 2).mean(axis=-1, keepdims=True)
    xn = (xg - mean) * lax.rsqrt(var + EPS)
    xn = xn.reshape(N, C, H, W)
    return (xn * gamma.reshape(1, C, 1, 1) + beta.reshape(1, C, 1, 1)).astype(x.dtype)


if __name__ == "__main__":
    key = jax.random.PRNGKey(0)
    kx, kg, kb = jax.random.split(key, 3)

    N, C, H, W = 2, 4, 16, 16
    num_groups = 2

    x = jax.random.normal(kx, (N, C, H, W), dtype=jnp.float32)
    # Deterministic affine parameters (synthetic init, not a checkpoint load).
    gamma = 1.0 + 0.1 * jax.random.normal(kg, (C,), dtype=jnp.float32)
    beta = 0.1 * jax.random.normal(kb, (C,), dtype=jnp.float32)

    ref = group_norm_ref(x, gamma, beta, num_groups)

    # Main (group-fused) path.
    out = jax.block_until_ready(group_norm_2d(x, gamma, beta, num_groups))
    assert out.shape == (N, C, H, W)
    assert jnp.max(jnp.abs(out - ref)) < 1e-4

    # Spatial-split fallback path (large-group case), exercised at small shape.
    out2 = jax.block_until_ready(
        group_norm_2d(x, gamma, beta, num_groups, force_spatial_split=True))
    assert jnp.max(jnp.abs(out2 - ref)) < 1e-4

    print("KERNEL_OK")
</pallas_src>

<mosaic_0001>
module attributes {stable_mosaic.version = 11 : i64} {
  func.func @_gn_fused_kernel(%arg0: i32, %arg1: i32, %arg2: memref<1x2x2x256xf32, #tpu.memory_space<vmem>>, %arg3: memref<2x2x1xf32, #tpu.memory_space<vmem>>, %arg4: memref<2x2x1xf32, #tpu.memory_space<vmem>>, %arg5: memref<1x2x2x256xf32, #tpu.memory_space<vmem>>) attributes {dimension_semantics = [#tpu.dimension_semantics<parallel>, #tpu.dimension_semantics<parallel>], iteration_bounds = array<i64: 2, 1>, scalar_prefetch = 0 : i64, scratch_operands = 0 : i64, tpu.core_type = #tpu.core_type<tc>, window_params = [{transform_indices = @transform_0, window_bounds = array<i64: 1, 2, 2, 256>}, {pipeline_mode = #tpu.pipeline_mode<synchronous>, transform_indices = @transform_1, window_bounds = array<i64: 2, 2, 1>}, {pipeline_mode = #tpu.pipeline_mode<synchronous>, transform_indices = @transform_2, window_bounds = array<i64: 2, 2, 1>}, {transform_indices = @transform_3, window_bounds = array<i64: 1, 2, 2, 256>}]} {
    %c2_i32 = arith.constant 2 : i32
    %0 = arith.muli %arg1, %c2_i32 : i32
    %c0 = arith.constant 0 : index
    %c0_0 = arith.constant 0 : index
    %c0_1 = arith.constant 0 : index
    %c0_2 = arith.constant 0 : index
    %1 = vector.load %arg2[%c0, %c0_0, %c0_1, %c0_2] : memref<1x2x2x256xf32, #tpu.memory_space<vmem>>, vector<1x2x2x256xf32>
    %2 = vector.shape_cast %1 : vector<1x2x2x256xf32> to vector<2x2x256xf32>
    %cst = arith.constant dense<0.000000e+00> : vector<2x2xf32>
    %3 = vector.multi_reduction <add>, %2, %cst [2] : vector<2x2x256xf32> to vector<2x2xf32>
    %4 = vector.shape_cast %3 : vector<2x2xf32> to vector<2x2x1xf32>
    %cst_3 = arith.constant dense<0.000000e+00> : vector<2x1xf32>
    %5 = vector.multi_reduction <add>, %4, %cst_3 [1] : vector<2x2x1xf32> to vector<2x1xf32>
    %6 = vector.shape_cast %5 : vector<2x1xf32> to vector<2x1x1xf32>
    %cst_4 = arith.constant 0.001953125 : f32
    %7 = vector.broadcast %cst_4 : f32 to vector<2x1x1xf32>
    %8 = arith.mulf %6, %7 : vector<2x1x1xf32>
    %c0_5 = arith.constant 0 : index
    %c0_6 = arith.constant 0 : index
    %c0_7 = arith.constant 0 : index
    %c0_8 = arith.constant 0 : index
    %9 = vector.load %arg2[%c0_5, %c0_6, %c0_7, %c0_8] : memref<1x2x2x256xf32, #tpu.memory_space<vmem>>, vector<1x2x2x256xf32>
    %10 = vector.shape_cast %9 : vector<1x2x2x256xf32> to vector<2x2x256xf32>
    %11 = vector.broadcast %8 : vector<2x1x1xf32> to vector<2x2x256xf32>
    %12 = arith.subf %10, %11 : vector<2x2x256xf32>
    %13 = arith.mulf %12, %12 : vector<2x2x256xf32>
    %cst_9 = arith.constant dense<0.000000e+00> : vector<2x2xf32>
    %14 = vector.multi_reduction <add>, %13, %cst_9 [2] : vector<2x2x256xf32> to vector<2x2xf32>
    %15 = vector.shape_cast %14 : vector<2x2xf32> to vector<2x2x1xf32>
    %cst_10 = arith.constant dense<0.000000e+00> : vector<2x1xf32>
    %16 = vector.multi_reduction <add>, %15, %cst_10 [1] : vector<2x2x1xf32> to vector<2x1xf32>
    %17 = vector.shape_cast %16 : vector<2x1xf32> to vector<2x1x1xf32>
    %cst_11 = arith.constant 0.001953125 : f32
    %18 = vector.broadcast %cst_11 : f32 to vector<2x1x1xf32>
    %19 = arith.mulf %17, %18 : vector<2x1x1xf32>
    %cst_12 = arith.constant 9.99999974E-6 : f32
    %20 = vector.broadcast %cst_12 : f32 to vector<2x1x1xf32>
    %21 = arith.addf %19, %20 : vector<2x1x1xf32>
    %22 = math.rsqrt %21 : vector<2x1x1xf32>
    %23 = arith.index_cast %0 : i32 to index
    %c0_13 = arith.constant 0 : index
    %c0_14 = arith.constant 0 : index
    %24 = vector.load %arg3[%23, %c0_13, %c0_14] : memref<2x2x1xf32, #tpu.memory_space<vmem>>, vector<2x2x1xf32>
    %25 = arith.index_cast %0 : i32 to index
    %c0_15 = arith.constant 0 : index
    %c0_16 = arith.constant 0 : index
    %26 = vector.load %arg4[%25, %c0_15, %c0_16] : memref<2x2x1xf32, #tpu.memory_space<vmem>>, vector<2x2x1xf32>
    %27 = vector.broadcast %22 : vector<2x1x1xf32> to vector<2x2x1xf32>
    %28 = arith.mulf %24, %27 : vector<2x2x1xf32>
    %29 = vector.broadcast %8 : vector<2x1x1xf32> to vector<2x2x1xf32>
    %30 = arith.mulf %29, %28 : vector<2x2x1xf32>
    %31 = arith.subf %26, %30 : vector<2x2x1xf32>
    %c0_17 = arith.constant 0 : index
    %c0_18 = arith.constant 0 : index
    %c0_19 = arith.constant 0 : index
    %c0_20 = arith.constant 0 : index
    %32 = vector.load %arg2[%c0_17, %c0_18, %c0_19, %c0_20] : memref<1x2x2x256xf32, #tpu.memory_space<vmem>>, vector<1x2x2x256xf32>
    %33 = vector.shape_cast %32 : vector<1x2x2x256xf32> to vector<2x2x256xf32>
    %34 = vector.broadcast %28 : vector<2x2x1xf32> to vector<2x2x256xf32>
    %35 = arith.mulf %33, %34 : vector<2x2x256xf32>
    %36 = vector.broadcast %31 : vector<2x2x1xf32> to vector<2x2x256xf32>
    %37 = arith.addf %35, %36 : vector<2x2x256xf32>
    %c0_21 = arith.constant 0 : index
    %c0_22 = arith.constant 0 : index
    %c0_23 = arith.constant 0 : index
    %c0_24 = arith.constant 0 : index
    %38 = vector.load %arg5[%c0_21, %c0_22, %c0_23, %c0_24] : memref<1x2x2x256xf32, #tpu.memory_space<vmem>>, vector<1x2x2x256xf32>
    %39 = vector.shape_cast %38 : vector<1x2x2x256xf32> to vector<2x2x256xf32>
    %40 = vector.shape_cast %37 : vector<2x2x256xf32> to vector<1x2x2x256xf32>
    tpu.vector_store %arg5[%c0_21, %c0_22, %c0_23, %c0_24], %40 {strides = array<i32>} : memref<1x2x2x256xf32, #tpu.memory_space<vmem>>, vector<1x2x2x256xf32>,
    return
  }
  func.func @transform_0(%arg0: i32, %arg1: i32) -> (i32, i32, i32, i32) {
    %c0_i32 = arith.constant 0 : i32
    %c0_i32_0 = arith.constant 0 : i32
    %c0_i32_1 = arith.constant 0 : i32
    return %arg0, %arg1, %c0_i32, %c0_i32_0 : i32, i32, i32, i32
  }
  func.func @transform_1(%arg0: i32, %arg1: i32) -> (i32, i32, i32) {
    %c0_i32 = arith.constant 0 : i32
    %c0_i32_0 = arith.constant 0 : i32
    %c0_i32_1 = arith.constant 0 : i32
    %c0_i32_2 = arith.constant 0 : i32
    return %c0_i32, %c0_i32_0, %c0_i32_1 : i32, i32, i32
  }
  func.func @transform_2(%arg0: i32, %arg1: i32) -> (i32, i32, i32) {
    %c0_i32 = arith.constant 0 : i32
    %c0_i32_0 = arith.constant 0 : i32
    %c0_i32_1 = arith.constant 0 : i32
    %c0_i32_2 = arith.constant 0 : i32
    return %c0_i32, %c0_i32_0, %c0_i32_1 : i32, i32, i32
  }
  func.func @transform_3(%arg0: i32, %arg1: i32) -> (i32, i32, i32, i32) {
    %c0_i32 = arith.constant 0 : i32
    %c0_i32_0 = arith.constant 0 : i32
    %c0_i32_1 = arith.constant 0 : i32
    return %arg0, %arg1, %c0_i32, %c0_i32_0 : i32, i32, i32, i32
  }
}

</mosaic_0001>

<bundles_post_ra>
// kernel: tpu_custom_call.1
= control target key start
LH: loop header
LB: loop body
LE: loop exit
PB: predicated region body
PF: predicated region fallthrough
CT: control target
= control target key end

     0   :  { %8 = vsyncpa [#allocation3], 0  ;;  %s883_s0 = inlined_call_operand.hbm [shape: f32[2,2,2,256], index: 0, kind: input, shape index: {}]   ;;  %s884_s1 = inlined_call_operand.vmem [shape: f32[2,2,1], index: 1, kind: input, shape index: {}]   ;;  %s885_s2 = inlined_call_operand.vmem [shape: f32[2,2,1], index: 2, kind: input, shape index: {}]   ;;  %s886_s3 = inlined_call_operand.hbm [shape: f32[2,2,2,256], index: 3, kind: output, shape index: {}]  }
   0x1   :  { %10 = vsyncpa [#allocation3 + $0x1], 0 }
   0x2   :  { %11 = vsyncpa [#allocation4], 0 }
   0x3   :  { %13 = vsyncpa [#allocation4 + $0x1], 0  ;;  %s717_s12 = smov 0   ;;  %s719_s13 = smov 0  }
   0x4   :  { %s721_s14 = smov 0   ;;  %s723_s15 = smov 0  }
   0x5   :  { %s725_s16 = smov 0   ;;  %s727_s17 = smov 0  }
   0x6 LB: > { %s485_s18 = sadd.s32 4294967295, %s689_s17   ;;  %s486_s19 = sadd.s32 4294967294, %s689_s17   ;;  %s689_s17 = sphi %s727_s17, %s19_s17   ;;  %s685_s16 = sphi %s725_s16, %s895_s16   ;;  %s681_s15 = sphi %s723_s15, %s894_s15   ;;  %s677_s14 = sphi %s721_s14, %s893_s14   ;;  %s673_s13 = sphi %s719_s13, %s892_s13   ;;  %s669_s12 = sphi %s717_s12, %s891_s12  }
   0x7   : > { %s31_s20 = sadd.s32 1, %s685_s16  ;;  %s40_s21 = sadd.s32 1, %s677_s14 }
   0x8   : > { %p33_p0 = scmp.ge.s32.totalorder %s31_s20, 2  ;;  %p47_p1 = scmp.ne.s32.totalorder %s677_s14, %s673_s13 }
   0x9   : > { %p48_p2 = scmp.eq.s32.totalorder %s689_s17, 0  ;;  %p53_p3 = scmp.ne.s32.totalorder %s673_s13, %s669_s12 }
   0xa   : > { %s897_s20 = smov (%p33_p0, %s31_s20), 0  ;;  %p54_p5 = scmp.eq.s32.totalorder %s485_s18, 0 }
   0xb   : > { %p758_p4 = por %p48_p2, %p47_p1  ;;  %s35_s23 = ssub.s32 %s685_s16, %s897_s20 }
   0xc   : > { %p121_p6 = scmp.eq.s32.totalorder %s485_s18, 1  ;;  %p38_p7 = scmp.eq.s32.totalorder %s35_s23, 0 }
   0xd   : > { %p764_p8 = por %p54_p5, %p53_p3  ;;  %p127_p10 = scmp.eq.s32.totalorder %s486_s19, 1 }
   0xe   : > { %p768_p9 = por %p121_p6, %p47_p1  ;;  %p488_p12 = scmp.ge.s32.totalorder %s689_s17, 2 }
   0xf   : > { %s773_s26 = scalar_select %p38_p7, %s677_s14, %s40_s21  }
  0x10   : > { %p775_p11 = por %p127_p10, %p53_p3  ;;  %p514_p13 = scmp.lt.s32.totalorder %s689_s17, 2 }
  0x11   : > { %s153_s28 = sand.u32 1, %s677_s14   ;;  %s500_s30 = sshll.u32 %s685_s16, 3 }
  0x12   : > { %s489_s29 = sshll.u32 %s153_s28, 3  ;;  %s165_s6 = scalar_lea.hbm %s883_s0, %s500_s30 }
  0x13   : > { %s157_s7 = scalar_lea.vmem [#allocation2], %s489_s29  ;;  %s166_s9 = sshll.u32 %s165_s6, 4  ;;  %s167_s9 = int_to_ptr.hbm [resolvable:$true] %s166_s9 }
  0x14   : > { %s168_s8 = sshll.u32 %s157_s7, 4  ;;  %p507_p0 = pnand %p514_p13, %p758_p4  ;;  %s169_s8 = int_to_ptr.vmem [resolvable:$true] %s168_s8 }
  0x15   : > { %p492_p1 = scmp.ge.s32.totalorder %s689_s17, 1  ;;  %s154_s10 = scalar_lea.sflag [#allocation3], %s153_s28 }
  0x16   : > { %s691_s11 = smov 64   ;;  %s692_s18 = smov 4  }
  0x17   : > { %509 = dma.hbm_to_vmem [thread:$0]  (!%p507_p0), %s167_s9, 128, %s169_s8, %s154_s10, %s691_s11, %s691_s11, %s692_s18  }
  0x18   : > { %p176_p2 = scmp.lt.s32.totalorder %s689_s17, 3 }
  0x1a   : > { %p177_p3 = pnand %p492_p1, %p176_p2 }
  0x1b   : > { %s791_s19 = sand.u32 (!%p177_p3), 1, %s673_s13  }
  0x1c   : > { %180 = sbr.rel (%p177_p3) target bundleno = 480 (0x1e0), region = 32  ;;  %s493_s21 = sshll.u32 (!%p177_p3), %s791_s19, 3 }
  0x1d   : > { %s183_s23 = scalar_lea.sflag (!%p177_p3), [#allocation3], %s791_s19  ;;  %s186_s22 = scalar_lea.vmem (!%p177_p3), [#allocation2], %s493_s21 }
  0x21   : > { %660 = dma.done.wait (%p764_p8), %s183_s23, 128  }
  0x22   : > { %662 = vsyncadd (%p764_p8), %s183_s23, 4294967168  ;;  %v801_v0 = vld [vmem:[%s186_s22] sm:$0xf]  ;;  %v803_v1 = vld [vmem:[%s186_s22 + $0x4] sm:$0xf]  ;;  %vm228_vm0 = vcmask 1041408  }
  0x23   : > { %217 = vst [vmem:[#allocation1] ss:$4 sm:$0xff] %v801_v0  ;;  %v693_v47 = vmov 0   ;;  %s501_s8 = sshll.u32 %s681_s15, 3  ;;  %s209_s18 = scalar_lea.vmem [#allocation5], %s493_s21 }
  0x24   : > { %221 = vst [vmem:[#allocation1 + $0x20] ss:$4 sm:$0xff] %v803_v1  ;;  %570 = vset.pattern.permute.xlu2 %v693_v47  ;;  %571 = vset.pattern.permute.xlu0 %v693_v47  ;;  %s390_s11 = scalar_lea.hbm %s886_s3, %s501_s8  ;;  %s391_s23 = sshll.u32 %s209_s18, 4  ;;  %s392_s23 = int_to_ptr.vmem [resolvable:$true] %s391_s23 }
  0x25   : > { %572 = vset.pattern.permute.xlu1 %v693_v47  ;;  %s393_s22 = sshll.u32 %s390_s11, 4  ;;  %s376_s15 = scalar_lea.sflag [#allocation4], %s791_s19  ;;  %s394_s22 = int_to_ptr.hbm [resolvable:$true] %s393_s22 }
  0x26   : > { %s621_s24 = sshra.s32 %s394_s22, 4  ;;  %s627_s30 = scalar_lea.hbm %s886_s3, 16  ;;  %s622_s24 = int_to_ptr.hbm [resolvable:$true] %s621_s24 }
  0x27   : > { %s623_s28 = scalar_lea.hbm %s622_s24, 8  ;;  %p628_p7 = scmp.lt.s32.totalorder %s622_s24, %s886_s3 }
  0x28   : > { %p624_p4 = scmp.ne.s32.totalorder %s622_s24, %s623_s28  ;;  %p629_p8 = scmp.lt.s32.totalorder %s627_s30, %s623_s28 }
  0x2a   : > { %v218_v2 = vld.sshfl [vmem:[#allocation1] sm:$0xff pattern:$0x73625140]  ;;  %v219_v3 = vld.sshfl [vmem:[#allocation1 + $0x8] sm:$0xff pattern:$0x73625140]  ;;  %p625_p5 = pnand %p624_p4, %p768_p9  ;;  %p630_p10 = por %p629_p8, %p628_p7 }
  0x2b   : > { %v229_v4 = vsel %vm228_vm0, %v218_v2, 0.0  ;;  %v230_v5 = vsel %vm228_vm0, %v219_v3, 0.0  ;;  %v222_v7 = vld.sshfl [vmem:[#allocation1 + $0x20] sm:$0xff pattern:$0x73625140] }
  0x2c   : > { %v231_v6 = vadd.f32 %v230_v5, %v229_v4  ;;  %v223_v8 = vld.sshfl [vmem:[#allocation1 + $0x28] sm:$0xff pattern:$0x73625140]  ;;  %v234_v9 = vsel %vm228_vm0, %v222_v7, 0.0  ;;  %p626_p6 = pneg %p625_p5 }
  0x2d   : > { %v235_v10 = vsel %vm228_vm0, %v223_v8, 0.0 }
  0x2e   : > { %232 = vadd.xlane.f32.xlu0 %v231_v6  ;;  %v236_v11 = vadd.f32 %v235_v10, %v234_v9  ;;  %p631_p13 = pnand %p630_p10, %p626_p6 }
  0x36   : > { %237 = vadd.xlane.f32.xlu0 %v236_v11  ;;  %v322_v11 = vld [vmem:[%s884_s1] sm:$0x3] }
  0xa1   : > { %v233_v12 = vpop.xlane.xlu0 %232 }
  0xa2   : > { %v239_v13 = vsel %vm228_vm0, %v233_v12, 0.0 }
  0xa3   : > { %v240_v14 = vrot.slane %v239_v13, 4 }
  0xa5   : > { %v241_v15 = vadd.f32 %v240_v14, %v239_v13 }
  0xa7   : > { %v242_v16 = vrot.slane %v241_v15, 2 }
  0xa9   : > { %v243_v17 = vadd.f32 %v242_v16, %v241_v15  ;;  %v238_v18 = vpop.xlane.xlu0 %237  ;;  %v325_v15 = vld [vmem:[%s885_s2] sm:$0x3] }
  0xaa   : > { %v246_v19 = vsel %vm228_vm0, %v238_v18, 0.0 }
  0xab   : > { %v244_v20 = vrot.slane %v243_v17, 1  ;;  %v247_v21 = vrot.slane %v246_v19, 4 }
  0xad   : > { %v245_v22 = vadd.f32 %v244_v20, %v243_v17  ;;  %v248_v23 = vadd.f32 %v247_v21, %v246_v19  ;;  %v323_v21 = vld [vmem:[%s884_s1 + $0x2] sm:$0x3] }
  0xaf   : > { %v813_v24 = vmul.f32 0.001953125, %v245_v22  ;;  %v249_v25 = vrot.slane %v248_v23, 2 }
  0xb1   : > { %v255_v26 = vsub.f32 %v801_v0, %v813_v24  ;;  %v250_v27 = vadd.f32 %v249_v25, %v248_v23  ;;  %v326_v25 = vld [vmem:[%s885_s2 + $0x2] sm:$0x3] }
  0xb3   : > { %v257_v28 = vmul.f32 %v255_v26, %v255_v26  ;;  %v251_v29 = vrot.slane %v250_v27, 1 }
  0xb5   : > { %261 = vst [vmem:[#allocation1] ss:$4 sm:$0xff] %v257_v28  ;;  %v252_v30 = vadd.f32 %v251_v29, %v250_v27  ;;  %v694_v27 = vmov 269488144  }
  0xb6   : > { %v342_v28 = vunpack.c.l.s4 %v694_v27 }
  0xb7   : > { %v817_v31 = vmul.f32 0.001953125, %v252_v30 }
  0xb8   : > { %v343_v30 = vunpack.c.0.s8 %v342_v28 }
  0xb9   : > { %v256_v32 = vsub.f32 %v803_v1, %v817_v31 }
  0xbb   : > { %v258_v33 = vmul.f32 %v256_v32, %v256_v32 }
  0xbc   : > { %v262_v34 = vld.sshfl [vmem:[#allocation1] sm:$0xff pattern:$0x73625140]  ;;  %v263_v35 = vld.sshfl [vmem:[#allocation1 + $0x8] sm:$0xff pattern:$0x73625140] }
  0xbd   : > { %265 = vst [vmem:[#allocation1 + $0x20] ss:$4 sm:$0xff] %v258_v33  ;;  %v272_v36 = vsel %vm228_vm0, %v262_v34, 0.0  ;;  %v273_v37 = vsel %vm228_vm0, %v263_v35, 0.0 }
  0xbe   : > { %v274_v38 = vadd.f32 %v273_v37, %v272_v36 }
  0xc0   : > { %275 = vadd.xlane.f32.xlu1 %v274_v38 }
  0xc4   : > { %v266_v39 = vld.sshfl [vmem:[#allocation1 + $0x20] sm:$0xff pattern:$0x73625140]  ;;  %v267_v40 = vld.sshfl [vmem:[#allocation1 + $0x28] sm:$0xff pattern:$0x73625140] }
  0xc5   : > { %v277_v41 = vsel %vm228_vm0, %v266_v39, 0.0  ;;  %v278_v42 = vsel %vm228_vm0, %v267_v40, 0.0 }
  0xc6   : > { %v279_v43 = vadd.f32 %v278_v42, %v277_v41 }
  0xc8   : > { %280 = vadd.xlane.f32.xlu1 %v279_v43 }
 0x133   : > { %v276_v44 = vpop.xlane.xlu1 %275 }
 0x134   : > { %v282_v45 = vsel %vm228_vm0, %v276_v44, 0.0 }
 0x135   : > { %v283_v46 = vrot.slane %v282_v45, 4 }
 0x137   : > { %v284_v48 = vadd.f32 %v283_v46, %v282_v45 }
 0x139   : > { %v285_v49 = vrot.slane %v284_v48, 2 }
 0x13b   : > { %v286_v50 = vadd.f32 %v285_v49, %v284_v48  ;;  %v281_v51 = vpop.xlane.xlu1 %280 }
 0x13c   : > { %v289_v52 = vsel %vm228_vm0, %v281_v51, 0.0 }
 0x13d   : > { %v287_v53 = vrot.slane %v286_v50, 1  ;;  %v290_v54 = vrot.slane %v289_v52, 4 }
 0x13f   : > { %v288_v55 = vadd.f32 %v287_v53, %v286_v50  ;;  %v291_v56 = vadd.f32 %v290_v54, %v289_v52 }
 0x141   : > { %v296_v57 = vmul.f32 0.001953125, %v288_v55  ;;  %v292_v58 = vrot.slane %v291_v56, 2 }
 0x143   : > { %v298_v59 = vadd.f32 1e-05, %v296_v57  ;;  %v293_v60 = vadd.f32 %v292_v58, %v291_v56 }
 0x145   : > { %573 = vrsqrt.f32 %v298_v59  ;;  %v294_v61 = vrot.slane %v293_v60, 1  ;;  %vm306_vm2 = vweird.f32 %v298_v59 }
 0x147   : > { %v295_v62 = vadd.f32 %v294_v61, %v293_v60 }
 0x149   : > { %v297_v63 = vmul.f32 0.001953125, %v295_v62 }
 0x14b   : > { %v574_v2 = vpop.eup %573  ;;  %v299_v3 = vadd.f32 1e-05, %v297_v63 }
 0x14c   : > { %v301_v4 = vmul.f32 %v574_v2, %v298_v59  ;;  %vm307_vm1 = vweird.f32 %v574_v2 }
 0x14d   : > { %575 = vrsqrt.f32 %v299_v3  ;;  %vm308_vm3 = vmor %vm306_vm2, %vm307_vm1  ;;  %vm316_vm5 = vweird.f32 %v299_v3 }
 0x14e   : > { %v302_v5 = vmul.f32 %v574_v2, %v301_v4 }
 0x150   : > { %v303_v6 = vmul.f32 0.5, %v302_v5 }
 0x152   : > { %v304_v7 = vsub.f32 1.5, %v303_v6 }
 0x153   : > { %v576_v8 = vpop.eup %575 }
 0x154   : > { %v311_v9 = vmul.f32 %v576_v8, %v299_v3  ;;  %v305_v10 = vmul.f32 %v574_v2, %v304_v7  ;;  %vm317_vm4 = vweird.f32 %v576_v8 }
 0x155   : > { %vm318_vm6 = vmor %vm316_vm5, %vm317_vm4 }
 0x156   : > { %v309_v12 = vsel %vm308_vm3, %v574_v2, %v305_v10  ;;  %v312_v13 = vmul.f32 %v576_v8, %v311_v9 }
 0x157   : > { %v327_v14 = vmul.f32 %v322_v11, %v309_v12 }
 0x158   : > { %v313_v16 = vmul.f32 0.5, %v312_v13 }
 0x159   : > { %335 = vperm.xlu2 %570, %v327_v14   ;;  %v329_v17 = vmul.f32 %v327_v14, %v813_v24 }
 0x15a   : > { %v314_v18 = vsub.f32 1.5, %v313_v16 }
 0x15b   : > { %v331_v19 = vsub.f32 %v325_v15, %v329_v17 }
 0x15c   : > { %v315_v20 = vmul.f32 %v576_v8, %v314_v18 }
 0x15d   : > { %355 = vperm.xlu0 %571, %v331_v19  }
 0x15e   : > { %v319_v22 = vsel %vm318_vm6, %v576_v8, %v315_v20 }
 0x15f   : > { %v328_v23 = vmul.f32 %v323_v21, %v319_v22 }
 0x161   : > { %339 = vperm.xlu2 %570, %v328_v23   ;;  %v330_v24 = vmul.f32 %v328_v23, %v817_v31 }
 0x163   : > { %v332_v26 = vsub.f32 %v326_v25, %v330_v24 }
 0x165   : > { %359 = vperm.xlu1 %572, %v332_v26  }
 0x1b3   : > { %v336_v29 = vpop.permute.xlu2 %335 }
 0x1b4   : > { %v344_v32 = vperm.slane %v336_v29, %v343_v30 }
 0x1b6   : > { %v351_v34 = vmul.f32 %v344_v32, %v801_v0 }
 0x1bb   : > { %v340_v36 = vpop.permute.xlu2 %339 }
 0x1bc   : > { %v348_v31 = vperm.slane %v340_v36, %v343_v30 }
 0x1be   : > { %v352_v39 = vmul.f32 %v348_v31, %v803_v1 }
 0x1cf   : > { %v356_v33 = vpop.permute.xlu0 %355 }
 0x1d0   : > { %v364_v35 = vperm.slane %v356_v33, %v343_v30 }
 0x1d2   : > { %v371_v37 = vadd.f32 %v364_v35, %v351_v34 }
 0x1d4   : > { %373 = vst [vmem:[%s209_s18] sm:$0xf] %v371_v37 }
 0x1d7   : > { %v360_v38 = vpop.permute.xlu1 %359 }
 0x1d8   : > { %v368_v0 = vperm.slane %v360_v38, %v343_v30 }
 0x1da   : > { %v372_v40 = vadd.f32 %v368_v0, %v352_v39 }
 0x1dc   : > { %374 = vst [vmem:[%s209_s18 + $0x4] sm:$0xf] %v372_v40 }
 0x1dd   : > { %634 = shalt.err (!%p631_p13)
}
 0x1de   : > { %s695_s19 = smov 64   ;;  %s696_s6 = smov 4  }
 0x1df   : > { %504 = dma.vmem_to_hbm [thread:$0]  (%p768_p9), %s392_s23, 128, %s394_s22, %s376_s15, %s695_s19, %s695_s19, %s696_s6  }
 0x1e0 PF: > { %s408_s7 = sand.u32 1, %s669_s12   ;;  %p511_p0 = pnand %p488_p12, %p775_p11 }
 0x1e1   : > { %s409_s8 = scalar_lea.sflag [#allocation4], %s408_s7 }
 0x1e2   : > { %p512_p1 = pneg %p511_p0 }
 0x1e4   : > { %664 = dma.done.wait (%p512_p1), %s409_s8, 128  }
 0x1e5   : > { %666 = vsyncadd (%p512_p1), %s409_s8, 4294967168  ;;  %s19_s17 = sadd.s32 1, %s689_s17   ;;  %s891_s12 = smov %s673_s13 }
 0x1e6   : > { %p16_p2 = scmp.ge.s32.totalorder %s19_s17, 4   ;;  %s892_s13 = smov %s677_s14 }
 0x1e7   : > { %s893_s14 = smov %s773_s26  ;;  %s894_s15 = smov %s685_s16 }
 0x1e8   : > { %s895_s16 = smov %s897_s20  ;;  %18 = sbr.rel (!%p16_p2) target bundleno = 6 (0x6), region = 81 }
 0x1ed   :  { %415 = vsyncpa [#allocation3], 1 }
 0x1ee   :  { %417 = vsyncpa [#allocation3 + $0x1], 1 }
 0x1ef   :  { %418 = vsyncpa [#allocation4], 1 }
 0x1f0   :  { %420 = vsyncpa [#allocation4 + $0x1], 1 }

</bundles_post_ra>
